<compile_context>
chip_gen: v6e
topology: v6e:2x2x1
jax: 0.10.0
libtpu: 0.0.40
codegen_flags: <defaults>
</compile_context>

<pallas_src>
import functools

import jax
import jax.numpy as jnp
from jax.experimental import pallas as pl
from jax.experimental.pallas import tpu as pltpu


LANES = 128
MAX_TILE_ROWS = 512   # ~256 KiB f32 block; VMEM stays well under scoped limits


def _round_up(a: int, m: int) -> int:
    return ((a + m - 1) // m) * m


def _sublane_multiple(dtype) -> int:
    # (8,128) tile for 32-bit, (16,128) for 16-bit, (32,128) for 8-bit dtypes.
    return {4: 8, 2: 16, 1: 32}.get(jnp.dtype(dtype).itemsize, 8)


def _plan_tiles(n: int, dtype):
    rows = pl.cdiv(n, LANES)
    sub = _sublane_multiple(dtype)
    tile_rows = min(MAX_TILE_ROWS, _round_up(rows, sub))
    rows_pad = _round_up(rows, tile_rows)
    return tile_rows, rows_pad


def _inv_normal_cdf(u):
    """Acklam's rational approximation of the standard-normal quantile.

    `u` must lie strictly inside (0, 1).  Max abs error ~1.2e-9 — far more
    accuracy than dropout noise needs.  Uses only mul/add/div/log/sqrt/where,
    all of which lower cleanly in Mosaic (no sin/cos needed, unlike Box-Muller).
    """
    a0, a1, a2, a3, a4, a5 = (-3.969683028665376e+01, 2.209460984245205e+02,
                              -2.759285104469687e+02, 1.383577518672690e+02,
                              -3.066479806614716e+01, 2.506628277459239e+00)
    b0, b1, b2, b3, b4 = (-5.447609879822406e+01, 1.615858368580409e+02,
                          -1.556989798598866e+02, 6.680131188771972e+01,
                          -1.328068155288572e+01)
    c0, c1, c2, c3, c4, c5 = (-7.784894002430293e-03, -3.223964580411365e-01,
                              -2.400758277161838e+00, -2.549732539343734e+00,
                              4.374664141464968e+00, 2.938163982698783e+00)
    d0, d1, d2, d3 = (7.784695709041462e-03, 3.224671290700398e-01,
                      2.445134137142996e+00, 3.754408661907416e+00)
    p_low = 0.02425

    # Central region |u - 0.5| <= 0.5 - p_low.
    q = u - 0.5
    r = q * q
    num_c = (((((a0 * r + a1) * r + a2) * r + a3) * r + a4) * r + a5) * q
    den_c = ((((b0 * r + b1) * r + b2) * r + b3) * r + b4) * r + 1.0
    x_cen = num_c / den_c

    # Tails, computed branch-free on t = min(u, 1-u) then sign-flipped.
    t = jnp.minimum(u, 1.0 - u)
    qt = jnp.sqrt(-2.0 * jnp.log(t))
    num_t = ((((c0 * qt + c1) * qt + c2) * qt + c3) * qt + c4) * qt + c5
    den_t = (((d0 * qt + d1) * qt + d2) * qt + d3) * qt + 1.0
    x_tail = jnp.where(u > 0.5, -(num_t / den_t), num_t / den_t)

    return jnp.where(t < p_low, x_tail, x_cen)


# ------------------------- TPU path: in-kernel PRNG -------------------------

def _gd_prng_kernel(seed_ref, x_ref, o_ref, *, stddev: float):
    # Independent stream per block: two seed words (seed, block) avoid the
    # additive (seed+block) aliasing across calls.
    pltpu.prng_seed(seed_ref[0], pl.program_id(0))
    bits = pltpu.bitcast(pltpu.prng_random_bits(x_ref.shape), jnp.int32)
    # Top 24 bits -> uniform strictly inside (0, 1).
    u24 = ((bits >> 8) & jnp.int32(0x00FFFFFF)).astype(jnp.float32)
    u = u24 * jnp.float32(1.0 / (1 << 24)) + jnp.float32(0.5 / (1 << 24))
    eps = _inv_normal_cdf(u) * jnp.float32(stddev)           # ~N(0, stddev^2)
    o_ref[...] = (x_ref[...].astype(jnp.float32) * eps).astype(o_ref.dtype)


@functools.partial(jax.jit, static_argnames=("p",))
def _gaussian_dropout_tpu(x, seed, *, p: float):
    stddev = float((p / (1.0 - p)) ** 0.5)
    orig_shape, dtype = x.shape, x.dtype
    n = x.size
    tile_rows, rows_pad = _plan_tiles(n, dtype)
    n_pad = rows_pad * LANES

    flat = x.reshape(-1)
    if n_pad != n:                       # only pay a pad pass for ragged sizes
        flat = jnp.pad(flat, (0, n_pad - n))
    x2d = flat.reshape(rows_pad, LANES)

    seed_arr = jnp.asarray(seed, dtype=jnp.int32).reshape(1)

    out2d = pl.pallas_call(
        functools.partial(_gd_prng_kernel, stddev=stddev),
        out_shape=jax.ShapeDtypeStruct((rows_pad, LANES), dtype),
        grid_spec=pltpu.PrefetchScalarGridSpec(
            num_scalar_prefetch=1,
            grid=(rows_pad // tile_rows,),
            in_specs=[pl.BlockSpec((tile_rows, LANES), lambda i, s: (i, 0))],
            out_specs=pl.BlockSpec((tile_rows, LANES), lambda i, s: (i, 0)),
        ),
        compiler_params=pltpu.CompilerParams(
            dimension_semantics=("parallel",),   # blocks are independent
        ),
    )(seed_arr, x2d)

    out = out2d.reshape(-1)
    if n_pad != n:
        out = out[:n]
    return out.reshape(orig_shape)


# ----------------- Fallback path: precomputed noise (any backend) -----------

def _gd_mul_kernel(x_ref, e_ref, o_ref, *, stddev: float):
    x = x_ref[...].astype(jnp.float32)
    e = e_ref[...].astype(jnp.float32)
    o_ref[...] = (x * (e * jnp.float32(stddev))).astype(o_ref.dtype)


@functools.partial(jax.jit, static_argnames=("p",))
def _gaussian_dropout_fallback(x, seed, *, p: float):
    stddev = float((p / (1.0 - p)) ** 0.5)
    orig_shape, dtype = x.shape, x.dtype
    n = x.size
    tile_rows, rows_pad = _plan_tiles(n, dtype)
    n_pad = rows_pad * LANES

    flat = x.reshape(-1)
    if n_pad != n:
        flat = jnp.pad(flat, (0, n_pad - n))
    x2d = flat.reshape(rows_pad, LANES)

    eps_dtype = dtype if jnp.issubdtype(dtype, jnp.floating) else jnp.float32
    key = jax.random.PRNGKey(jnp.asarray(seed, dtype=jnp.uint32))
    eps2d = jax.random.normal(key, (rows_pad, LANES), dtype=eps_dtype)

    out2d = pl.pallas_call(
        functools.partial(_gd_mul_kernel, stddev=stddev),
        out_shape=jax.ShapeDtypeStruct((rows_pad, LANES), dtype),
        grid=(rows_pad // tile_rows,),
        in_specs=[pl.BlockSpec((tile_rows, LANES), lambda i: (i, 0)),
                  pl.BlockSpec((tile_rows, LANES), lambda i: (i, 0))],
        out_specs=pl.BlockSpec((tile_rows, LANES), lambda i: (i, 0)),
        compiler_params=pltpu.CompilerParams(
            dimension_semantics=("parallel",),
        ),
    )(x2d, eps2d)

    out = out2d.reshape(-1)
    if n_pad != n:
        out = out[:n]
    return out.reshape(orig_shape)


# --------------------------------- Wrapper ----------------------------------

def gaussian_dropout(x: jax.Array, p: float = 0.5, seed: int = 0,
                     training: bool = True) -> jax.Array:
    """Forward pass of the PyTorch GaussianDropout module."""
    if p <= 0 or p >= 1:
        raise Exception('p value should accomplish 0 < p < 1')
    if not training:
        return x
    if jax.default_backend() == "tpu":
        return _gaussian_dropout_tpu(x, seed, p=float(p))
    # TODO(synk): pltpu.prng_seed/prng_random_bits only lower on real TPUs; on
    # other backends (e.g. CPU interpret) generate the noise with jax.random
    # and fuse the scale+multiply in a Pallas kernel instead.
    return _gaussian_dropout_fallback(x, seed, p=float(p))


if __name__ == "__main__":
    key = jax.random.PRNGKey(0)
    x = jax.random.normal(key, (2, 4, 16, 16), dtype=jnp.float32)

    p = 0.5
    stddev = (p / (1.0 - p)) ** 0.5

    y = gaussian_dropout(x, p=p, seed=1234, training=True)
    y = jax.block_until_ready(y)
    assert y.shape == x.shape and y.dtype == x.dtype

    # Recover the multiplicative noise and check it is ~N(0, stddev^2).
    mask = jnp.abs(x) > 1e-6
    eps = jnp.where(mask, y / jnp.where(mask, x, 1.0), 0.0)
    n_valid = jnp.sum(mask)
    mean = jnp.sum(eps) / n_valid
    var = jnp.sum(jnp.where(mask, (eps - mean) ** 2, 0.0)) / n_valid
    std = jnp.sqrt(var)
    assert jnp.abs(mean) < 0.15, f"noise mean off: {mean}"
    assert 0.75 * stddev < std < 1.25 * stddev, f"noise std off: {std}"

    # Different seeds give different noise.
    y2 = jax.block_until_ready(gaussian_dropout(x, p=p, seed=4321, training=True))
    assert not jnp.allclose(y, y2)

    # Eval mode is the identity.
    y_eval = jax.block_until_ready(gaussian_dropout(x, p=p, seed=1234, training=False))
    assert jnp.array_equal(y_eval, x)

    print("KERNEL_OK")
</pallas_src>

<mosaic_0001>
module attributes {stable_mosaic.version = 11 : i64} {
  func.func @_gd_mul_kernel(%arg0: i32, %arg1: memref<16x128xf32, #tpu.memory_space<vmem>>, %arg2: memref<16x128xf32, #tpu.memory_space<vmem>>, %arg3: memref<16x128xf32, #tpu.memory_space<vmem>>) attributes {dimension_semantics = [#tpu.dimension_semantics<parallel>], iteration_bounds = array<i64: 1>, scalar_prefetch = 0 : i64, scratch_operands = 0 : i64, tpu.core_type = #tpu.core_type<tc>, window_params = [{transform_indices = @transform_0, window_bounds = array<i64: 16, 128>}, {transform_indices = @transform_1, window_bounds = array<i64: 16, 128>}, {transform_indices = @transform_2, window_bounds = array<i64: 16, 128>}]} {
    %c0 = arith.constant 0 : index
    %c0_0 = arith.constant 0 : index
    %0 = vector.load %arg1[%c0, %c0_0] : memref<16x128xf32, #tpu.memory_space<vmem>>, vector<16x128xf32>
    %c0_1 = arith.constant 0 : index
    %c0_2 = arith.constant 0 : index
    %1 = vector.load %arg2[%c0_1, %c0_2] : memref<16x128xf32, #tpu.memory_space<vmem>>, vector<16x128xf32>
    %cst = arith.constant 1.000000e+00 : f32
    %2 = vector.broadcast %cst : f32 to vector<16x128xf32>
    %3 = arith.mulf %1, %2 : vector<16x128xf32>
    %4 = arith.mulf %0, %3 : vector<16x128xf32>
    %c0_3 = arith.constant 0 : index
    %c0_4 = arith.constant 0 : index
    %5 = vector.load %arg3[%c0_3, %c0_4] : memref<16x128xf32, #tpu.memory_space<vmem>>, vector<16x128xf32>
    tpu.vector_store %arg3[%c0_3, %c0_4], %4 {strides = array<i32>} : memref<16x128xf32, #tpu.memory_space<vmem>>, vector<16x128xf32>,
    return
  }
  func.func @transform_0(%arg0: i32) -> (i32, i32) {
    %c0_i32 = arith.constant 0 : i32
    %c0_i32_0 = arith.constant 0 : i32
    return %arg0, %c0_i32 : i32, i32
  }
  func.func @transform_1(%arg0: i32) -> (i32, i32) {
    %c0_i32 = arith.constant 0 : i32
    %c0_i32_0 = arith.constant 0 : i32
    return %arg0, %c0_i32 : i32, i32
  }
  func.func @transform_2(%arg0: i32) -> (i32, i32) {
    %c0_i32 = arith.constant 0 : i32
    %c0_i32_0 = arith.constant 0 : i32
    return %arg0, %c0_i32 : i32, i32
  }
}

</mosaic_0001>

<bundles_post_ra>
// kernel: _gaussian_dropout_fallback.1
= control target key start
LH: loop header
LB: loop body
LE: loop exit
PB: predicated region body
PF: predicated region fallthrough
CT: control target
= control target key end

     0   :  { %s56_s0 = inlined_call_operand.vmem [shape: f32[16,128], index: 0, kind: input, shape index: {}]   ;;  %s57_s1 = inlined_call_operand.vmem [shape: f32[16,128], index: 1, kind: input, shape index: {}]   ;;  %s58_s2 = inlined_call_operand.vmem [shape: f32[16,128], index: 2, kind: output, shape index: {}]  }
   0x1   :  { %v11_v0 = vld [vmem:[%s56_s0] sm:$0xff]  ;;  %v12_v2 = vld [vmem:[%s56_s0 + $0x8] sm:$0xff] }
   0x2   :  { %v13_v1 = vld [vmem:[%s57_s1] sm:$0xff]  ;;  %v14_v4 = vld [vmem:[%s57_s1 + $0x8] sm:$0xff] }
   0x3   :  { %v15_v3 = vmul.f32 %v13_v1, %v11_v0  ;;  %v16_v5 = vmul.f32 %v14_v4, %v12_v2 }
   0x5   :  { %17 = vst [vmem:[%s58_s2] sm:$0xff] %v15_v3  ;;  %18 = vst [vmem:[%s58_s2 + $0x8] sm:$0xff] %v16_v5 }

</bundles_post_ra>
